<compile_context>
chip_gen: v5e
topology: v5e:2x2
jax: 0.10.0
libtpu: 0.0.40
codegen_flags: <defaults>
</compile_context>

<pallas_src>
import jax
import jax.numpy as jnp
import numpy as np
from jax.experimental import pallas as pl
from jax.experimental.pallas import tpu as pltpu


def make_basic_conv_in_kernel(H, W, Cin, Cout, batch_tile, eps, negative_slope,
                              mxu_dtype):
    """Fused kernel: conv3x3 (s=1, p=1, no bias) + InstanceNorm2d + LeakyReLU.

    Layout inside the kernel (per grid step = `batch_tile` batch elements):
      x_ref : (batch_tile, Cin, H*W)   input dtype, spatial flattened onto lanes
      w_ref : (3, Cout, 3*Cin)         ky-major weights, mxu_dtype (bf16)
      o_ref : (batch_tile, Cout, H*W)  lane-dense output
      p_ref : (3*Cin, batch_tile*H*W)  VMEM scratch: ONE ky-plane of the im2col
                                       patch matrix (K layout: kx=0 | kx=1 | kx=2)
    """
    HW = H * W

    def kernel(x_ref, w_ref, o_ref, p_ref):
        # Hoisted boundary masks at full (Cin, HW) so the unrolled loops below
        # do not re-broadcast (JAX does not CSE broadcast_in_dim).
        q = jax.lax.broadcasted_iota(jnp.int32, (Cin, HW), 1)
        col = q % W
        not_first_col = col != 0            # left neighbor is x = -1 padding
        not_last_col = col != (W - 1)       # right neighbor is x = W padding
        not_first_row = q >= W              # up neighbor is y = -1 padding
        not_last_row = q < (HW - W)         # down neighbor is y = H padding

        acc = jnp.zeros((Cout, batch_tile * HW), jnp.float32)

        for ky in range(3):
            # Build one ky-plane of the patch matrix for all batch_tile elements.
            for bt in range(batch_tile):
                xb = x_ref[bt].astype(mxu_dtype)                   # (Cin, HW)
                if ky == 0:      # input row y-1: lane roll by +W, mask first row
                    rows = jnp.where(not_first_row, pltpu.roll(xb, W, 1), 0.0)
                elif ky == 1:    # input row y: no shift, no mask
                    rows = xb
                else:            # input row y+1: lane roll by -W, mask last row
                    rows = jnp.where(not_last_row,
                                     pltpu.roll(xb, HW - W, 1), 0.0)
                left = jnp.where(not_first_col,
                                 pltpu.roll(rows, 1, 1), 0.0)       # x-1
                right = jnp.where(not_last_col,
                                  pltpu.roll(rows, HW - 1, 1), 0.0)  # x+1
                c0 = bt * HW
                p_ref[0:Cin, c0:c0 + HW] = left
                p_ref[Cin:2 * Cin, c0:c0 + HW] = rows
                p_ref[2 * Cin:3 * Cin, c0:c0 + HW] = right

            # MXU: (Cout, 3*Cin) @ (3*Cin, batch_tile*HW), f32 accumulate.
            acc = acc + jnp.dot(w_ref[ky], p_ref[...],
                                preferred_element_type=jnp.float32)

        # InstanceNorm2d (per batch element & channel over HW, biased variance,
        # no affine) + LeakyReLU.  Single-pass stats: E[x] and E[x^2].
        for bt in range(batch_tile):
            a = acc[:, bt * HW:(bt + 1) * HW]                     # aligned slice
            mean = jnp.mean(a, axis=1, keepdims=True)
            mean_sq = jnp.mean(a * a, axis=1, keepdims=True)
            var = mean_sq - mean * mean
            y = (a - mean) * jax.lax.rsqrt(var + eps)
            y = jnp.where(y >= 0, y, negative_slope * y)
            o_ref[bt] = y.astype(o_ref.dtype)

    return kernel


def basic_conv_in_forward(x_nchw, w3, *, eps=1e-5, negative_slope=0.01,
                          batch_tile=None, mxu_dtype=jnp.bfloat16):
    """x_nchw: (B, Cin, H, W).  w3: (3, Cout, 3*Cin) ky-major flattened weights."""
    B, Cin, H, W = x_nchw.shape
    KH, Cout, K3 = w3.shape
    assert KH == 3 and K3 == 3 * Cin
    HW = H * W
    # Lane-dense layout: H*W maps to TPU lanes.
    # TODO(synk): H*W not a multiple of 128 needs lane padding or a row-tiled
    #             grid axis; not needed at these demo shapes.
    assert HW % 128 == 0

    if batch_tile is None:
        # Largest divisor of B whose lane extent (batch_tile*HW) stays <= 2048,
        # so the MXU sees a wide N tile while the scratch stays small.
        batch_tile = 1
        for bt in range(1, B + 1):
            if B % bt == 0 and bt * HW <= 2048:
                batch_tile = bt
    assert B % batch_tile == 0

    x_flat = x_nchw.reshape(B, Cin, HW)     # free reshape, no jnp.pad HBM copy
    w3 = w3.astype(mxu_dtype)               # bf16-native MXU feed

    kernel = make_basic_conv_in_kernel(H, W, Cin, Cout, batch_tile, eps,
                                       negative_slope, mxu_dtype)

    grid_spec = pltpu.PrefetchScalarGridSpec(
        num_scalar_prefetch=0,
        grid=(B // batch_tile,),
        in_specs=[
            pl.BlockSpec((batch_tile, Cin, HW), lambda g: (g, 0, 0)),
            pl.BlockSpec((3, Cout, 3 * Cin), lambda g: (0, 0, 0)),
        ],
        out_specs=pl.BlockSpec((batch_tile, Cout, HW), lambda g: (g, 0, 0)),
        scratch_shapes=[pltpu.VMEM((3 * Cin, batch_tile * HW), mxu_dtype)],
    )

    out_flat = pl.pallas_call(
        kernel,
        out_shape=jax.ShapeDtypeStruct((B, Cout, HW), x_nchw.dtype),
        grid_spec=grid_spec,
        compiler_params=pltpu.CompilerParams(
            dimension_semantics=("parallel",),  # batch blocks are independent
        ),
    )(x_flat, w3)

    return out_flat.reshape(B, Cout, H, W)  # stays NCHW end-to-end


# ------------------------- parameter setup & reference -------------------------

def torch_w_to_kernel_w(w_oihw):
    """(O, I, 3, 3) torch layout -> (3, O, 3*I): w3[ky, o, kx*I + ci] = w[o, ci, ky, kx]."""
    O, I, KH, KW = w_oihw.shape
    return jnp.transpose(w_oihw, (2, 0, 3, 1)).reshape(KH, O, KW * I)


def reference_forward(x_nchw, w_oihw, *, eps=1e-5, negative_slope=0.01):
    """Pure-JAX reference: conv3x3 (p=1) + InstanceNorm2d + LeakyReLU, all f32."""
    dn = ("NCHW", "OIHW", "NCHW")
    y = jax.lax.conv_general_dilated(
        x_nchw, w_oihw, window_strides=(1, 1), padding=((1, 1), (1, 1)),
        dimension_numbers=dn)
    mean = jnp.mean(y, axis=(2, 3), keepdims=True)
    var = jnp.mean((y - mean) ** 2, axis=(2, 3), keepdims=True)
    y = (y - mean) * jax.lax.rsqrt(var + eps)
    return jnp.where(y >= 0, y, negative_slope * y)


if __name__ == "__main__":
    # Small shapes consistent with the module: 3x3 conv, 4 -> 8 channels.
    B, Cin, H, W = 2, 4, 16, 16
    Cout = 8

    key = jax.random.PRNGKey(0)
    k_x, k_w = jax.random.split(key, 2)

    x = jax.random.normal(k_x, (B, Cin, H, W), jnp.float32)
    # Conv weight in PyTorch layout (O, I, kh, kw), bias=False.
    w_oihw = jax.random.normal(k_w, (Cout, Cin, 3, 3), jnp.float32) * 0.1
    w3 = torch_w_to_kernel_w(w_oihw)  # (3, Cout, 3*Cin)

    ref = jax.block_until_ready(reference_forward(x, w_oihw))

    # f32-MXU path: tight numerical check of the fused conv + IN + LeakyReLU.
    out_f32 = jax.block_until_ready(
        basic_conv_in_forward(x, w3, mxu_dtype=jnp.float32))
    np.testing.assert_allclose(np.asarray(out_f32), np.asarray(ref),
                               rtol=1e-3, atol=1e-3)

    # bf16-MXU path (default, MXU-native): slightly looser tolerance — the
    # InstanceNorm absorbs most of the bf16 quantization but not all of it.
    out = jax.block_until_ready(basic_conv_in_forward(x, w3))
    np.testing.assert_allclose(np.asarray(out), np.asarray(ref),
                               rtol=3e-2, atol=3e-2)

    print("KERNEL_OK")
</pallas_src>

<mosaic_0001>
module attributes {stable_mosaic.version = 11 : i64} {
  func.func @kernel(%arg0: i32, %arg1: memref<2x4x256xf32, #tpu.memory_space<vmem>>, %arg2: memref<3x8x12xf32, #tpu.memory_space<vmem>>, %arg3: memref<2x8x256xf32, #tpu.memory_space<vmem>>, %arg4: memref<12x512xf32, #tpu.memory_space<vmem>>) attributes {dimension_semantics = [#tpu.dimension_semantics<parallel>], iteration_bounds = array<i64: 1>, scalar_prefetch = 0 : i64, scratch_operands = 1 : i64, tpu.core_type = #tpu.core_type<tc>, window_params = [{transform_indices = @transform_0, window_bounds = array<i64: 2, 4, 256>}, {pipeline_mode = #tpu.pipeline_mode<synchronous>, transform_indices = @transform_1, window_bounds = array<i64: 3, 8, 12>}, {transform_indices = @transform_2, window_bounds = array<i64: 2, 8, 256>}]} {
    %0 = tpu.iota {dimensions = array<i32: 1>} : vector<4x256xi32>
    %c16_i32 = arith.constant 16 : i32
    %c0_i32 = arith.constant 0 : i32
    %1 = arith.cmpi eq, %c16_i32, %c0_i32 : i32
    %c1_i32 = arith.constant 1 : i32
    %2 = arith.select %1, %c1_i32, %c16_i32 : i32
    %3 = vector.broadcast %2 : i32 to vector<4x256xi32>
    %4 = arith.remsi %0, %3 : vector<4x256xi32>
    %c0_i32_0 = arith.constant 0 : i32
    %5 = vector.broadcast %c0_i32_0 : i32 to vector<4x256xi32>
    %6 = arith.cmpi ne, %4, %5 : vector<4x256xi32>
    %c0_i32_1 = arith.constant 0 : i32
    %7 = vector.broadcast %c0_i32_1 : i32 to vector<4x256xi32>
    %8 = arith.cmpi slt, %4, %7 : vector<4x256xi32>
    %c0_i32_2 = arith.constant 0 : i32
    %9 = arith.cmpi slt, %2, %c0_i32_2 : i32
    %10 = vector.broadcast %9 : i1 to vector<4x256xi1>
    %11 = vector.broadcast %10 : vector<4x256xi1> to vector<4x256xi1>
    %12 = arith.xori %8, %11 : vector<4x256xi1>
    %13 = arith.andi %12, %6 : vector<4x256xi1>
    %14 = vector.broadcast %2 : i32 to vector<4x256xi32>
    %15 = arith.addi %4, %14 : vector<4x256xi32>
    %16 = arith.select %13, %15, %4 : vector<4x256xi1>, vector<4x256xi32>
    %c0_i32_3 = arith.constant 0 : i32
    %17 = vector.broadcast %c0_i32_3 : i32 to vector<4x256xi32>
    %18 = arith.cmpi ne, %16, %17 : vector<4x256xi32>
    %c15_i32 = arith.constant 15 : i32
    %19 = vector.broadcast %c15_i32 : i32 to vector<4x256xi32>
    %20 = arith.cmpi ne, %16, %19 : vector<4x256xi32>
    %c16_i32_4 = arith.constant 16 : i32
    %21 = vector.broadcast %c16_i32_4 : i32 to vector<4x256xi32>
    %22 = arith.cmpi sge, %0, %21 : vector<4x256xi32>
    %c240_i32 = arith.constant 240 : i32
    %23 = vector.broadcast %c240_i32 : i32 to vector<4x256xi32>
    %24 = arith.cmpi slt, %0, %23 : vector<4x256xi32>
    %cst = arith.constant 0.000000e+00 : f32
    %25 = vector.broadcast %cst : f32 to vector<8x512xf32>
    %c0 = arith.constant 0 : index
    %c0_5 = arith.constant 0 : index
    %c0_6 = arith.constant 0 : index
    %26 = vector.load %arg1[%c0, %c0_5, %c0_6] : memref<2x4x256xf32, #tpu.memory_space<vmem>>, vector<1x4x256xf32>
    %27 = vector.shape_cast %26 : vector<1x4x256xf32> to vector<4x256xf32>
    %c16_i32_7 = arith.constant 16 : i32
    %28 = tpu.dynamic_rotate %27 by %c16_i32_7 dim 1 : vector<4x256xf32>, i32 -> vector<4x256xf32>
    %cst_8 = arith.constant 0.000000e+00 : f32
    %29 = vector.broadcast %cst_8 : f32 to vector<4x256xf32>
    %30 = arith.select %22, %28, %29 : vector<4x256xi1>, vector<4x256xf32>
    %c1_i32_9 = arith.constant 1 : i32
    %31 = tpu.dynamic_rotate %30 by %c1_i32_9 dim 1 : vector<4x256xf32>, i32 -> vector<4x256xf32>
    %cst_10 = arith.constant 0.000000e+00 : f32
    %32 = vector.broadcast %cst_10 : f32 to vector<4x256xf32>
    %33 = arith.select %18, %31, %32 : vector<4x256xi1>, vector<4x256xf32>
    %c255_i32 = arith.constant 255 : i32
    %34 = tpu.dynamic_rotate %30 by %c255_i32 dim 1 : vector<4x256xf32>, i32 -> vector<4x256xf32>
    %cst_11 = arith.constant 0.000000e+00 : f32
    %35 = vector.broadcast %cst_11 : f32 to vector<4x256xf32>
    %36 = arith.select %20, %34, %35 : vector<4x256xi1>, vector<4x256xf32>
    %c0_12 = arith.constant 0 : index
    %c0_13 = arith.constant 0 : index
    %37 = vector.load %arg4[%c0_12, %c0_13] : memref<12x512xf32, #tpu.memory_space<vmem>>, vector<4x256xf32>
    tpu.vector_store %arg4[%c0_12, %c0_13], %33 {strides = array<i32>} : memref<12x512xf32, #tpu.memory_space<vmem>>, vector<4x256xf32>,
    %c4 = arith.constant 4 : index
    %c0_14 = arith.constant 0 : index
    %38 = vector.load %arg4[%c4, %c0_14] : memref<12x512xf32, #tpu.memory_space<vmem>>, vector<4x256xf32>
    tpu.vector_store %arg4[%c4, %c0_14], %30 {strides = array<i32>} : memref<12x512xf32, #tpu.memory_space<vmem>>, vector<4x256xf32>,
    %c8 = arith.constant 8 : index
    %c0_15 = arith.constant 0 : index
    %39 = vector.load %arg4[%c8, %c0_15] : memref<12x512xf32, #tpu.memory_space<vmem>>, vector<4x256xf32>
    tpu.vector_store %arg4[%c8, %c0_15], %36 {strides = array<i32>} : memref<12x512xf32, #tpu.memory_space<vmem>>, vector<4x256xf32>,
    %c1 = arith.constant 1 : index
    %c0_16 = arith.constant 0 : index
    %c0_17 = arith.constant 0 : index
    %40 = vector.load %arg1[%c1, %c0_16, %c0_17] : memref<2x4x256xf32, #tpu.memory_space<vmem>>, vector<1x4x256xf32>
    %41 = vector.shape_cast %40 : vector<1x4x256xf32> to vector<4x256xf32>
    %c16_i32_18 = arith.constant 16 : i32
    %42 = tpu.dynamic_rotate %41 by %c16_i32_18 dim 1 : vector<4x256xf32>, i32 -> vector<4x256xf32>
    %cst_19 = arith.constant 0.000000e+00 : f32
    %43 = vector.broadcast %cst_19 : f32 to vector<4x256xf32>
    %44 = arith.select %22, %42, %43 : vector<4x256xi1>, vector<4x256xf32>
    %c1_i32_20 = arith.constant 1 : i32
    %45 = tpu.dynamic_rotate %44 by %c1_i32_20 dim 1 : vector<4x256xf32>, i32 -> vector<4x256xf32>
    %cst_21 = arith.constant 0.000000e+00 : f32
    %46 = vector.broadcast %cst_21 : f32 to vector<4x256xf32>
    %47 = arith.select %18, %45, %46 : vector<4x256xi1>, vector<4x256xf32>
    %c255_i32_22 = arith.constant 255 : i32
    %48 = tpu.dynamic_rotate %44 by %c255_i32_22 dim 1 : vector<4x256xf32>, i32 -> vector<4x256xf32>
    %cst_23 = arith.constant 0.000000e+00 : f32
    %49 = vector.broadcast %cst_23 : f32 to vector<4x256xf32>
    %50 = arith.select %20, %48, %49 : vector<4x256xi1>, vector<4x256xf32>
    %c0_24 = arith.constant 0 : index
    %c256 = arith.constant 256 : index
    %51 = vector.load %arg4[%c0_24, %c256] : memref<12x512xf32, #tpu.memory_space<vmem>>, vector<4x256xf32>
    tpu.vector_store %arg4[%c0_24, %c256], %47 {strides = array<i32>} : memref<12x512xf32, #tpu.memory_space<vmem>>, vector<4x256xf32>,
    %c4_25 = arith.constant 4 : index
    %c256_26 = arith.constant 256 : index
    %52 = vector.load %arg4[%c4_25, %c256_26] : memref<12x512xf32, #tpu.memory_space<vmem>>, vector<4x256xf32>
    tpu.vector_store %arg4[%c4_25, %c256_26], %44 {strides = array<i32>} : memref<12x512xf32, #tpu.memory_space<vmem>>, vector<4x256xf32>,
    %c8_27 = arith.constant 8 : index
    %c256_28 = arith.constant 256 : index
    %53 = vector.load %arg4[%c8_27, %c256_28] : memref<12x512xf32, #tpu.memory_space<vmem>>, vector<4x256xf32>
    tpu.vector_store %arg4[%c8_27, %c256_28], %50 {strides = array<i32>} : memref<12x512xf32, #tpu.memory_space<vmem>>, vector<4x256xf32>,
    %c0_29 = arith.constant 0 : index
    %c0_30 = arith.constant 0 : index
    %c0_31 = arith.constant 0 : index
    %54 = vector.load %arg2[%c0_29, %c0_30, %c0_31] : memref<3x8x12xf32, #tpu.memory_space<vmem>>, vector<1x8x12xf32>
    %55 = vector.shape_cast %54 : vector<1x8x12xf32> to vector<8x12xf32>
    %c0_32 = arith.constant 0 : index
    %c0_33 = arith.constant 0 : index
    %56 = vector.load %arg4[%c0_32, %c0_33] : memref<12x512xf32, #tpu.memory_space<vmem>>, vector<12x512xf32>
    %cst_34 = arith.constant dense<0.000000e+00> : vector<8x512xf32>
    %57 = tpu.matmul %55, %56, %cst_34 {dimension_numbers = #tpu.dot_dimension_numbers<[1], [0], [0], [1], [0, 0, 1, 1], [], []>} : vector<8x12xf32>, vector<12x512xf32>, vector<8x512xf32> -> vector<8x512xf32>
    %58 = arith.addf %25, %57 : vector<8x512xf32>
    %c0_35 = arith.constant 0 : index
    %c0_36 = arith.constant 0 : index
    %c0_37 = arith.constant 0 : index
    %59 = vector.load %arg1[%c0_35, %c0_36, %c0_37] : memref<2x4x256xf32, #tpu.memory_space<vmem>>, vector<1x4x256xf32>
    %60 = vector.shape_cast %59 : vector<1x4x256xf32> to vector<4x256xf32>
    %c1_i32_38 = arith.constant 1 : i32
    %61 = tpu.dynamic_rotate %60 by %c1_i32_38 dim 1 : vector<4x256xf32>, i32 -> vector<4x256xf32>
    %cst_39 = arith.constant 0.000000e+00 : f32
    %62 = vector.broadcast %cst_39 : f32 to vector<4x256xf32>
    %63 = arith.select %18, %61, %62 : vector<4x256xi1>, vector<4x256xf32>
    %c255_i32_40 = arith.constant 255 : i32
    %64 = tpu.dynamic_rotate %60 by %c255_i32_40 dim 1 : vector<4x256xf32>, i32 -> vector<4x256xf32>
    %cst_41 = arith.constant 0.000000e+00 : f32
    %65 = vector.broadcast %cst_41 : f32 to vector<4x256xf32>
    %66 = arith.select %20, %64, %65 : vector<4x256xi1>, vector<4x256xf32>
    %c0_42 = arith.constant 0 : index
    %c0_43 = arith.constant 0 : index
    %67 = vector.load %arg4[%c0_42, %c0_43] : memref<12x512xf32, #tpu.memory_space<vmem>>, vector<4x256xf32>
    tpu.vector_store %arg4[%c0_42, %c0_43], %63 {strides = array<i32>} : memref<12x512xf32, #tpu.memory_space<vmem>>, vector<4x256xf32>,
    %c4_44 = arith.constant 4 : index
    %c0_45 = arith.constant 0 : index
    %68 = vector.load %arg4[%c4_44, %c0_45] : memref<12x512xf32, #tpu.memory_space<vmem>>, vector<4x256xf32>
    tpu.vector_store %arg4[%c4_44, %c0_45], %60 {strides = array<i32>} : memref<12x512xf32, #tpu.memory_space<vmem>>, vector<4x256xf32>,
    %c8_46 = arith.constant 8 : index
    %c0_47 = arith.constant 0 : index
    %69 = vector.load %arg4[%c8_46, %c0_47] : memref<12x512xf32, #tpu.memory_space<vmem>>, vector<4x256xf32>
    tpu.vector_store %arg4[%c8_46, %c0_47], %66 {strides = array<i32>} : memref<12x512xf32, #tpu.memory_space<vmem>>, vector<4x256xf32>,
    %c1_48 = arith.constant 1 : index
    %c0_49 = arith.constant 0 : index
    %c0_50 = arith.constant 0 : index
    %70 = vector.load %arg1[%c1_48, %c0_49, %c0_50] : memref<2x4x256xf32, #tpu.memory_space<vmem>>, vector<1x4x256xf32>
    %71 = vector.shape_cast %70 : vector<1x4x256xf32> to vector<4x256xf32>
    %c1_i32_51 = arith.constant 1 : i32
    %72 = tpu.dynamic_rotate %71 by %c1_i32_51 dim 1 : vector<4x256xf32>, i32 -> vector<4x256xf32>
    %cst_52 = arith.constant 0.000000e+00 : f32
    %73 = vector.broadcast %cst_52 : f32 to vector<4x256xf32>
    %74 = arith.select %18, %72, %73 : vector<4x256xi1>, vector<4x256xf32>
    %c255_i32_53 = arith.constant 255 : i32
    %75 = tpu.dynamic_rotate %71 by %c255_i32_53 dim 1 : vector<4x256xf32>, i32 -> vector<4x256xf32>
    %cst_54 = arith.constant 0.000000e+00 : f32
    %76 = vector.broadcast %cst_54 : f32 to vector<4x256xf32>
    %77 = arith.select %20, %75, %76 : vector<4x256xi1>, vector<4x256xf32>
    %c0_55 = arith.constant 0 : index
    %c256_56 = arith.constant 256 : index
    %78 = vector.load %arg4[%c0_55, %c256_56] : memref<12x512xf32, #tpu.memory_space<vmem>>, vector<4x256xf32>
    tpu.vector_store %arg4[%c0_55, %c256_56], %74 {strides = array<i32>} : memref<12x512xf32, #tpu.memory_space<vmem>>, vector<4x256xf32>,
    %c4_57 = arith.constant 4 : index
    %c256_58 = arith.constant 256 : index
    %79 = vector.load %arg4[%c4_57, %c256_58] : memref<12x512xf32, #tpu.memory_space<vmem>>, vector<4x256xf32>
    tpu.vector_store %arg4[%c4_57, %c256_58], %71 {strides = array<i32>} : memref<12x512xf32, #tpu.memory_space<vmem>>, vector<4x256xf32>,
    %c8_59 = arith.constant 8 : index
    %c256_60 = arith.constant 256 : index
    %80 = vector.load %arg4[%c8_59, %c256_60] : memref<12x512xf32, #tpu.memory_space<vmem>>, vector<4x256xf32>
    tpu.vector_store %arg4[%c8_59, %c256_60], %77 {strides = array<i32>} : memref<12x512xf32, #tpu.memory_space<vmem>>, vector<4x256xf32>,
    %c1_61 = arith.constant 1 : index
    %c0_62 = arith.constant 0 : index
    %c0_63 = arith.constant 0 : index
    %81 = vector.load %arg2[%c1_61, %c0_62, %c0_63] : memref<3x8x12xf32, #tpu.memory_space<vmem>>, vector<1x8x12xf32>
    %82 = vector.shape_cast %81 : vector<1x8x12xf32> to vector<8x12xf32>
    %c0_64 = arith.constant 0 : index
    %c0_65 = arith.constant 0 : index
    %83 = vector.load %arg4[%c0_64, %c0_65] : memref<12x512xf32, #tpu.memory_space<vmem>>, vector<12x512xf32>
    %cst_66 = arith.constant dense<0.000000e+00> : vector<8x512xf32>
    %84 = tpu.matmul %82, %83, %cst_66 {dimension_numbers = #tpu.dot_dimension_numbers<[1], [0], [0], [1], [0, 0, 1, 1], [], []>} : vector<8x12xf32>, vector<12x512xf32>, vector<8x512xf32> -> vector<8x512xf32>
    %85 = arith.addf %58, %84 : vector<8x512xf32>
    %c0_67 = arith.constant 0 : index
    %c0_68 = arith.constant 0 : index
    %c0_69 = arith.constant 0 : index
    %86 = vector.load %arg1[%c0_67, %c0_68, %c0_69] : memref<2x4x256xf32, #tpu.memory_space<vmem>>, vector<1x4x256xf32>
    %87 = vector.shape_cast %86 : vector<1x4x256xf32> to vector<4x256xf32>
    %c240_i32_70 = arith.constant 240 : i32
    %88 = tpu.dynamic_rotate %87 by %c240_i32_70 dim 1 : vector<4x256xf32>, i32 -> vector<4x256xf32>
    %cst_71 = arith.constant 0.000000e+00 : f32
    %89 = vector.broadcast %cst_71 : f32 to vector<4x256xf32>
    %90 = arith.select %24, %88, %89 : vector<4x256xi1>, vector<4x256xf32>
    %c1_i32_72 = arith.constant 1 : i32
    %91 = tpu.dynamic_rotate %90 by %c1_i32_72 dim 1 : vector<4x256xf32>, i32 -> vector<4x256xf32>
    %cst_73 = arith.constant 0.000000e+00 : f32
    %92 = vector.broadcast %cst_73 : f32 to vector<4x256xf32>
    %93 = arith.select %18, %91, %92 : vector<4x256xi1>, vector<4x256xf32>
    %c255_i32_74 = arith.constant 255 : i32
    %94 = tpu.dynamic_rotate %90 by %c255_i32_74 dim 1 : vector<4x256xf32>, i32 -> vector<4x256xf32>
    %cst_75 = arith.constant 0.000000e+00 : f32
    %95 = vector.broadcast %cst_75 : f32 to vector<4x256xf32>
    %96 = arith.select %20, %94, %95 : vector<4x256xi1>, vector<4x256xf32>
    %c0_76 = arith.constant 0 : index
    %c0_77 = arith.constant 0 : index
    %97 = vector.load %arg4[%c0_76, %c0_77] : memref<12x512xf32, #tpu.memory_space<vmem>>, vector<4x256xf32>
    tpu.vector_store %arg4[%c0_76, %c0_77], %93 {strides = array<i32>} : memref<12x512xf32, #tpu.memory_space<vmem>>, vector<4x256xf32>,
    %c4_78 = arith.constant 4 : index
    %c0_79 = arith.constant 0 : index
    %98 = vector.load %arg4[%c4_78, %c0_79] : memref<12x512xf32, #tpu.memory_space<vmem>>, vector<4x256xf32>
    tpu.vector_store %arg4[%c4_78, %c0_79], %90 {strides = array<i32>} : memref<12x512xf32, #tpu.memory_space<vmem>>, vector<4x256xf32>,
    %c8_80 = arith.constant 8 : index
    %c0_81 = arith.constant 0 : index
    %99 = vector.load %arg4[%c8_80, %c0_81] : memref<12x512xf32, #tpu.memory_space<vmem>>, vector<4x256xf32>
    tpu.vector_store %arg4[%c8_80, %c0_81], %96 {strides = array<i32>} : memref<12x512xf32, #tpu.memory_space<vmem>>, vector<4x256xf32>,
    %c1_82 = arith.constant 1 : index
    %c0_83 = arith.constant 0 : index
    %c0_84 = arith.constant 0 : index
    %100 = vector.load %arg1[%c1_82, %c0_83, %c0_84] : memref<2x4x256xf32, #tpu.memory_space<vmem>>, vector<1x4x256xf32>
    %101 = vector.shape_cast %100 : vector<1x4x256xf32> to vector<4x256xf32>
    %c240_i32_85 = arith.constant 240 : i32
    %102 = tpu.dynamic_rotate %101 by %c240_i32_85 dim 1 : vector<4x256xf32>, i32 -> vector<4x256xf32>
    %cst_86 = arith.constant 0.000000e+00 : f32
    %103 = vector.broadcast %cst_86 : f32 to vector<4x256xf32>
    %104 = arith.select %24, %102, %103 : vector<4x256xi1>, vector<4x256xf32>
    %c1_i32_87 = arith.constant 1 : i32
    %105 = tpu.dynamic_rotate %104 by %c1_i32_87 dim 1 : vector<4x256xf32>, i32 -> vector<4x256xf32>
    %cst_88 = arith.constant 0.000000e+00 : f32
    %106 = vector.broadcast %cst_88 : f32 to vector<4x256xf32>
    %107 = arith.select %18, %105, %106 : vector<4x256xi1>, vector<4x256xf32>
    %c255_i32_89 = arith.constant 255 : i32
    %108 = tpu.dynamic_rotate %104 by %c255_i32_89 dim 1 : vector<4x256xf32>, i32 -> vector<4x256xf32>
    %cst_90 = arith.constant 0.000000e+00 : f32
    %109 = vector.broadcast %cst_90 : f32 to vector<4x256xf32>
    %110 = arith.select %20, %108, %109 : vector<4x256xi1>, vector<4x256xf32>
    %c0_91 = arith.constant 0 : index
    %c256_92 = arith.constant 256 : index
    %111 = vector.load %arg4[%c0_91, %c256_92] : memref<12x512xf32, #tpu.memory_space<vmem>>, vector<4x256xf32>
    tpu.vector_store %arg4[%c0_91, %c256_92], %107 {strides = array<i32>} : memref<12x512xf32, #tpu.memory_space<vmem>>, vector<4x256xf32>,
    %c4_93 = arith.constant 4 : index
    %c256_94 = arith.constant 256 : index
    %112 = vector.load %arg4[%c4_93, %c256_94] : memref<12x512xf32, #tpu.memory_space<vmem>>, vector<4x256xf32>
    tpu.vector_store %arg4[%c4_93, %c256_94], %104 {strides = array<i32>} : memref<12x512xf32, #tpu.memory_space<vmem>>, vector<4x256xf32>,
    %c8_95 = arith.constant 8 : index
    %c256_96 = arith.constant 256 : index
    %113 = vector.load %arg4[%c8_95, %c256_96] : memref<12x512xf32, #tpu.memory_space<vmem>>, vector<4x256xf32>
    tpu.vector_store %arg4[%c8_95, %c256_96], %110 {strides = array<i32>} : memref<12x512xf32, #tpu.memory_space<vmem>>, vector<4x256xf32>,
    %c2 = arith.constant 2 : index
    %c0_97 = arith.constant 0 : index
    %c0_98 = arith.constant 0 : index
    %114 = vector.load %arg2[%c2, %c0_97, %c0_98] : memref<3x8x12xf32, #tpu.memory_space<vmem>>, vector<1x8x12xf32>
    %115 = vector.shape_cast %114 : vector<1x8x12xf32> to vector<8x12xf32>
    %c0_99 = arith.constant 0 : index
    %c0_100 = arith.constant 0 : index
    %116 = vector.load %arg4[%c0_99, %c0_100] : memref<12x512xf32, #tpu.memory_space<vmem>>, vector<12x512xf32>
    %cst_101 = arith.constant dense<0.000000e+00> : vector<8x512xf32>
    %117 = tpu.matmul %115, %116, %cst_101 {dimension_numbers = #tpu.dot_dimension_numbers<[1], [0], [0], [1], [0, 0, 1, 1], [], []>} : vector<8x12xf32>, vector<12x512xf32>, vector<8x512xf32> -> vector<8x512xf32>
    %118 = arith.addf %85, %117 : vector<8x512xf32>
    %119 = vector.extract_strided_slice %118 {offsets = [0, 0], sizes = [8, 256], strides = [1, 1]} : vector<8x512xf32> to vector<8x256xf32>
    %cst_102 = arith.constant dense<0.000000e+00> : vector<8xf32>
    %120 = vector.multi_reduction <add>, %119, %cst_102 [1] : vector<8x256xf32> to vector<8xf32>
    %121 = vector.shape_cast %120 : vector<8xf32> to vector<8x1xf32>
    %cst_103 = arith.constant 2.560000e+02 : f32
    %122 = vector.broadcast %cst_103 : f32 to vector<8x1xf32>
    %123 = arith.divf %121, %122 : vector<8x1xf32>
    %124 = arith.mulf %119, %119 : vector<8x256xf32>
    %cst_104 = arith.constant dense<0.000000e+00> : vector<8xf32>
    %125 = vector.multi_reduction <add>, %124, %cst_104 [1] : vector<8x256xf32> to vector<8xf32>
    %126 = vector.shape_cast %125 : vector<8xf32> to vector<8x1xf32>
    %cst_105 = arith.constant 2.560000e+02 : f32
    %127 = vector.broadcast %cst_105 : f32 to vector<8x1xf32>
    %128 = arith.divf %126, %127 : vector<8x1xf32>
    %129 = arith.mulf %123, %123 : vector<8x1xf32>
    %130 = arith.subf %128, %129 : vector<8x1xf32>
    %131 = vector.broadcast %123 : vector<8x1xf32> to vector<8x256xf32>
    %132 = arith.subf %119, %131 : vector<8x256xf32>
    %cst_106 = arith.constant 9.99999974E-6 : f32
    %133 = vector.broadcast %cst_106 : f32 to vector<8x1xf32>
    %134 = arith.addf %130, %133 : vector<8x1xf32>
    %135 = math.rsqrt %134 : vector<8x1xf32>
    %136 = vector.broadcast %135 : vector<8x1xf32> to vector<8x256xf32>
    %137 = arith.mulf %132, %136 : vector<8x256xf32>
    %cst_107 = arith.constant 0.000000e+00 : f32
    %138 = vector.broadcast %cst_107 : f32 to vector<8x256xf32>
    %139 = arith.cmpf oge, %137, %138 : vector<8x256xf32>
    %cst_108 = arith.constant 0.00999999977 : f32
    %140 = vector.broadcast %cst_108 : f32 to vector<8x256xf32>
    %141 = arith.mulf %140, %137 : vector<8x256xf32>
    %142 = arith.select %139, %137, %141 : vector<8x256xi1>, vector<8x256xf32>
    %c0_109 = arith.constant 0 : index
    %c0_110 = arith.constant 0 : index
    %c0_111 = arith.constant 0 : index
    %143 = vector.load %arg3[%c0_109, %c0_110, %c0_111] : memref<2x8x256xf32, #tpu.memory_space<vmem>>, vector<1x8x256xf32>
    %144 = vector.shape_cast %143 : vector<1x8x256xf32> to vector<8x256xf32>
    %145 = vector.shape_cast %142 : vector<8x256xf32> to vector<1x8x256xf32>
    tpu.vector_store %arg3[%c0_109, %c0_110, %c0_111], %145 {strides = array<i32>} : memref<2x8x256xf32, #tpu.memory_space<vmem>>, vector<1x8x256xf32>,
    %146 = vector.extract_strided_slice %118 {offsets = [0, 256], sizes = [8, 256], strides = [1, 1]} : vector<8x512xf32> to vector<8x256xf32>
    %cst_112 = arith.constant dense<0.000000e+00> : vector<8xf32>
    %147 = vector.multi_reduction <add>, %146, %cst_112 [1] : vector<8x256xf32> to vector<8xf32>
    %148 = vector.shape_cast %147 : vector<8xf32> to vector<8x1xf32>
    %cst_113 = arith.constant 2.560000e+02 : f32
    %149 = vector.broadcast %cst_113 : f32 to vector<8x1xf32>
    %150 = arith.divf %148, %149 : vector<8x1xf32>
    %151 = arith.mulf %146, %146 : vector<8x256xf32>
    %cst_114 = arith.constant dense<0.000000e+00> : vector<8xf32>
    %152 = vector.multi_reduction <add>, %151, %cst_114 [1] : vector<8x256xf32> to vector<8xf32>
    %153 = vector.shape_cast %152 : vector<8xf32> to vector<8x1xf32>
    %cst_115 = arith.constant 2.560000e+02 : f32
    %154 = vector.broadcast %cst_115 : f32 to vector<8x1xf32>
    %155 = arith.divf %153, %154 : vector<8x1xf32>
    %156 = arith.mulf %150, %150 : vector<8x1xf32>
    %157 = arith.subf %155, %156 : vector<8x1xf32>
    %158 = vector.broadcast %150 : vector<8x1xf32> to vector<8x256xf32>
    %159 = arith.subf %146, %158 : vector<8x256xf32>
    %cst_116 = arith.constant 9.99999974E-6 : f32
    %160 = vector.broadcast %cst_116 : f32 to vector<8x1xf32>
    %161 = arith.addf %157, %160 : vector<8x1xf32>
    %162 = math.rsqrt %161 : vector<8x1xf32>
    %163 = vector.broadcast %162 : vector<8x1xf32> to vector<8x256xf32>
    %164 = arith.mulf %159, %163 : vector<8x256xf32>
    %cst_117 = arith.constant 0.000000e+00 : f32
    %165 = vector.broadcast %cst_117 : f32 to vector<8x256xf32>
    %166 = arith.cmpf oge, %164, %165 : vector<8x256xf32>
    %cst_118 = arith.constant 0.00999999977 : f32
    %167 = vector.broadcast %cst_118 : f32 to vector<8x256xf32>
    %168 = arith.mulf %167, %164 : vector<8x256xf32>
    %169 = arith.select %166, %164, %168 : vector<8x256xi1>, vector<8x256xf32>
    %c1_119 = arith.constant 1 : index
    %c0_120 = arith.constant 0 : index
    %c0_121 = arith.constant 0 : index
    %170 = vector.load %arg3[%c1_119, %c0_120, %c0_121] : memref<2x8x256xf32, #tpu.memory_space<vmem>>, vector<1x8x256xf32>
    %171 = vector.shape_cast %170 : vector<1x8x256xf32> to vector<8x256xf32>
    %172 = vector.shape_cast %169 : vector<8x256xf32> to vector<1x8x256xf32>
    tpu.vector_store %arg3[%c1_119, %c0_120, %c0_121], %172 {strides = array<i32>} : memref<2x8x256xf32, #tpu.memory_space<vmem>>, vector<1x8x256xf32>,
    return
  }
  func.func @transform_0(%arg0: i32) -> (i32, i32, i32) {
    %c0_i32 = arith.constant 0 : i32
    %c0_i32_0 = arith.constant 0 : i32
    %c0_i32_1 = arith.constant 0 : i32
    return %arg0, %c0_i32, %c0_i32_0 : i32, i32, i32
  }
  func.func @transform_1(%arg0: i32) -> (i32, i32, i32) {
    %c0_i32 = arith.constant 0 : i32
    %c0_i32_0 = arith.constant 0 : i32
    %c0_i32_1 = arith.constant 0 : i32
    %c0_i32_2 = arith.constant 0 : i32
    return %c0_i32, %c0_i32_0, %c0_i32_1 : i32, i32, i32
  }
  func.func @transform_2(%arg0: i32) -> (i32, i32, i32) {
    %c0_i32 = arith.constant 0 : i32
    %c0_i32_0 = arith.constant 0 : i32
    %c0_i32_1 = arith.constant 0 : i32
    return %arg0, %c0_i32, %c0_i32_0 : i32, i32, i32
  }
}

</mosaic_0001>

<bundles_post_ra>
// kernel: tpu_custom_call.1
= control target key start
LH: loop header
LB: loop body
LE: loop exit
PB: predicated region body
PF: predicated region fallthrough
CT: control target
= control target key end

     0   :  { %7 = vsyncpa [#allocation4], 0  ;;  %s1166_s0 = inlined_call_operand.hbm [shape: f32[2,4,256], index: 0, kind: input, shape index: {}]   ;;  %s1167_s1 = inlined_call_operand.hbm [shape: f32[3,8,12], index: 1, kind: input, shape index: {}]   ;;  %s1168_s2 = inlined_call_operand.hbm [shape: f32[2,8,256], index: 2, kind: output, shape index: {}]  }
   0x1   :  { %8 = vsyncpa [#allocation7], 0 }
   0x2   :  { %9 = vsyncpa [#allocation5], 0  ;;  %s14_s11 = sshll.u32 %s1166_s0, 4  ;;  %s873_s12 = smov [#allocation3]   ;;  %s15_s11 = int_to_ptr.hbm [resolvable:$true] %s14_s11 }
   0x3   :  { %s16_s13 = sshll.u32 %s873_s12, 4  ;;  %s27_s16 = sshll.u32 %s1167_s1, 4  ;;  %s17_s13 = int_to_ptr.vmem [resolvable:$true] %s16_s13  ;;  %s28_s16 = int_to_ptr.hbm [resolvable:$true] %s27_s16 }
   0x4   :  { %s874_s17 = smov 128   ;;  %s875_s18 = smov 8  }
   0x5   :  { %22 = dma.hbm_to_vmem [thread:$0]  %s15_s11, 256, %s17_s13, [#allocation4], %s874_s17, %s874_s17, %s875_s18  }
   0x6   :  { %s876_s19 = smov [#allocation6]  }
   0x7   :  { %s29_s20 = sshll.u32 %s876_s19, 4  ;;  %s30_s20 = int_to_ptr.vmem [resolvable:$true] %s29_s20 }
   0x8   :  { %35 = dma.hbm_to_vmem [thread:$0]  %s28_s16, 384, %s30_s20, [#allocation7], %s874_s17, %s874_s17, %s875_s18  }
   0x9   :  { %867 = dma.done.wait [#allocation4], 256  }
   0xa   :  { %868 = vsyncadd [#allocation4], 4294967040 }
   0xb   :  { %869 = dma.done.wait [#allocation7], 384  }
   0xc   :  { %870 = vsyncadd [#allocation7], 4294966912  ;;  %v79_v0 = vld [vmem:[#allocation3] sm:$0xff]  ;;  %v126_v1 = vld [vmem:[#allocation3 + $0x8] sm:$0xff]  ;;  %s877_s0 = smov 16   ;;  %s878_s1 = smov 1   ;;  %v44_v22 = vlaneseq }
   0xd   :  { %81 = vst [vmem:[#allocation1] ss:$2 sm:$0xff] %v79_v0  ;;  %s879_s21 = smov 127   ;;  %s880_s22 = smov 112   ;;  %vm272_vm10 = vcmask 1043456   ;;  %vm268_vm11 = vcmask 97280  }
   0xe   :  { %v925_v24 = vand.u32 127, %v44_v22  ;;  %s740_s25 = sshll.u32 %s1168_s2, 4  ;;  %s882_s26 = smov [#allocation8]   ;;  %s741_s25 = int_to_ptr.hbm [resolvable:$true] %s740_s25 }
   0xf   :  { %s738_s27 = sshll.u32 %s882_s26, 4  ;;  %s883_s28 = smov 256   ;;  %s739_s27 = int_to_ptr.vmem [resolvable:$true] %s738_s27 }
  0x10   :  { %vm90_vm0 = vcmp.lt.s32.totalorder %v925_v24, 16  ;;  %vm75_vm1 = vcmp.ge.s32.totalorder %v925_v24, 16  ;;  %vm99_vm2 = vcmp.lt.s32.totalorder %v925_v24, 1  ;;  %v51_v43 = vand.u32 15, %v925_v24 }
  0x11   :  { %vm108_vm3 = vcmp.lt.s32.totalorder %v925_v24, 127  ;;  %vm471_vm5 = vcmp.lt.s32.totalorder %v925_v24, 112  ;;  %v46_v52 = vadd.s32 128, %v925_v24 }
  0x12   :  { %vm966_vm4 = vcmp.ne.s32.totalorder %v51_v43, 15  ;;  %vm1007_vm7 = vcmp.ne.s32.totalorder %v51_v43, 0 }
  0x13   :  { %vm78_vm6 = vcmp.lt.s32.totalorder %v46_v52, 240  ;;  %v58_v63 = vand.u32 15, %v46_v52 }
  0x14   :  { %v82_v2 = vld.sshfl [vmem:[#allocation1] sm:$0xff pattern:$0x75316420]  ;;  %v83_v3 = vld.sshfl [vmem:[#allocation1 + $0x8] sm:$0xff pattern:$0x75316420] }
  0x15   :  { %86 = vrot.lane.b32.xlu1 %v82_v2, %s877_s0  ;;  %128 = vst [vmem:[#allocation1] ss:$2 sm:$0xff] %v126_v1  ;;  %vm1011_vm8 = vcmp.ne.s32.totalorder %v58_v63, 0  ;;  %vm1023_vm9 = vcmp.ne.s32.totalorder %v58_v63, 15 }
  0x1c   :  { %v129_v4 = vld.sshfl [vmem:[#allocation1] sm:$0xff pattern:$0x75316420]  ;;  %v130_v5 = vld.sshfl [vmem:[#allocation1 + $0x8] sm:$0xff pattern:$0x75316420] }
  0x1d   :  { %88 = vrot.lane.b32.xlu1 %v83_v3, %s877_s0  ;;  %133 = vrot.lane.b32.xlu0 %v129_v4, %s877_s0  ;;  %180 = vst [vmem:[#allocation1] ss:$2 sm:$0xff] %v79_v0 }
  0x24   :  { %v908_v6 = vld.sshfl [vmem:[#allocation1] sm:$0xff pattern:$0x75316420]  ;;  %v910_v7 = vld.sshfl [vmem:[#allocation1 + $0x8] sm:$0xff pattern:$0x75316420] }
  0x25   :  { %135 = vrot.lane.b32.xlu0 %v130_v5, %s877_s0  ;;  %193 = vst [vmem:[#allocation1] ss:$2 sm:$0xff] %v79_v0 }
  0x2c   :  { %v194_v8 = vld.sshfl [vmem:[#allocation1] sm:$0xff pattern:$0x75316420]  ;;  %v195_v9 = vld.sshfl [vmem:[#allocation1 + $0x8] sm:$0xff pattern:$0x75316420] }
  0x2d   :  { %209 = vst [vmem:[#allocation1 + $0x1] ss:$2 sm:$0xff] %v79_v0 }
  0x34   :  { %v913_v10 = vld.sshfl [vmem:[#allocation1] sm:$0xff pattern:$0x75316420]  ;;  %v915_v11 = vld.sshfl [vmem:[#allocation1 + $0x8] sm:$0xff pattern:$0x75316420] }
  0x35   :  { %220 = vst [vmem:[#allocation1] ss:$2 sm:$0xff] %v126_v1 }
  0x3c   :  { %v222_v12 = vld.sshfl [vmem:[#allocation1 + $0x8] sm:$0xff pattern:$0x75316420]  ;;  %v221_v13 = vld.sshfl [vmem:[#allocation1] sm:$0xff pattern:$0x75316420] }
  0x3d   :  { %227 = vrot.lane.b32.xlu1 %v222_v12, %s878_s1  ;;  %225 = vrot.lane.b32.xlu0 %v221_v13, %s878_s1  ;;  %233 = vst [vmem:[#allocation1] ss:$2 sm:$0xff] %v126_v1 }
  0x44   :  { %v234_v14 = vld.sshfl [vmem:[#allocation1] sm:$0xff pattern:$0x75316420]  ;;  %v235_v15 = vld.sshfl [vmem:[#allocation1 + $0x8] sm:$0xff pattern:$0x75316420] }
  0x45   :  { %238 = vrot.lane.b32.xlu1 %v234_v14, %s879_s21  ;;  %240 = vrot.lane.b32.xlu2 %v235_v15, %s879_s21  ;;  %249 = vst [vmem:[#allocation1 + $0x1] ss:$2 sm:$0xff] %v126_v1 }
  0x4c   :  { %v921_v16 = vld.sshfl [vmem:[#allocation1] sm:$0xff pattern:$0x75316420]  ;;  %v923_v17 = vld.sshfl [vmem:[#allocation1 + $0x8] sm:$0xff pattern:$0x75316420] }
  0x4d   :  { %462 = vst [vmem:[#allocation1] ss:$2 sm:$0xff] %v79_v0 }
  0x54   :  { %v464_v18 = vld.sshfl [vmem:[#allocation1 + $0x8] sm:$0xff pattern:$0x75316420]  ;;  %v463_v19 = vld.sshfl [vmem:[#allocation1] sm:$0xff pattern:$0x75316420] }
  0x55   :  { %469 = vrot.lane.b32.xlu1 %v464_v18, %s880_s22  ;;  %467 = vrot.lane.b32.xlu0 %v463_v19, %s880_s22  ;;  %506 = vst [vmem:[#allocation1] ss:$2 sm:$0xff] %v126_v1 }
  0x5c   :  { %v507_v20 = vld.sshfl [vmem:[#allocation1] sm:$0xff pattern:$0x75316420]  ;;  %v508_v21 = vld.sshfl [vmem:[#allocation1 + $0x8] sm:$0xff pattern:$0x75316420] }
  0x5d   :  { %511 = vrot.lane.b32.xlu2 %v507_v20, %s880_s22 }
  0x65   :  { %513 = vrot.lane.b32.xlu2 %v508_v21, %s880_s22 }
  0x87   :  { %v87_v23 = vpop.permute.xlu1 %86 }
  0x8f   :  { %v89_v25 = vpop.permute.xlu1 %88  ;;  %v134_v26 = vpop.permute.xlu0 %133 }
  0x90   :  { %v92_v27 = vsel %vm90_vm0, %v89_v25, %v87_v23  ;;  %v91_v28 = vsel %vm90_vm0, %v87_v23, %v89_v25 }
  0x91   :  { %v118_v29 = vrot.slane %v91_v28, 4  ;;  %97 = vrot.lane.b32.xlu0 %v91_v28, %s878_s1  ;;  %106 = vrot.lane.b32.xlu1 %v91_v28, %s879_s21  ;;  %v93_v30 = vsel %vm75_vm1, %v92_v27, 0.0 }
  0x92   :  { %v117_v31 = vrot.slane %v93_v30, 4  ;;  %95 = vrot.lane.b32.xlu2 %v93_v30, %s878_s1 }
  0x93   :  { %122 = vst [vmem:[#allocation2] sm:$0xf0] %v118_v29 }
  0x94   :  { %121 = vst [vmem:[#allocation2 + $0x30] sm:$0xf0] %v117_v31 }
  0x97   :  { %v136_v32 = vpop.permute.xlu0 %135 }
  0x98   :  { %v138_v33 = vsel %vm90_vm0, %v136_v32, %v134_v26  ;;  %v137_v34 = vsel %vm90_vm0, %v134_v26, %v136_v32 }
  0x99   :  { %104 = vrot.lane.b32.xlu0 %v93_v30, %s879_s21  ;;  %v139_v35 = vsel %vm75_vm1, %v138_v33, 0.0  ;;  %v162_v36 = vrot.slane %v137_v34, 4 }
  0x9a   :  { %v161_v37 = vrot.slane %v139_v35, 4  ;;  %141 = vrot.lane.b32.xlu1 %v139_v35, %s878_s1  ;;  %143 = vrot.lane.b32.xlu2 %v137_v34, %s878_s1 }
  0x9b   :  { %166 = vst [vmem:[#allocation2 + $0x10] sm:$0xf0] %v162_v36 }
  0x9c   :  { %165 = vst [vmem:[#allocation2 + $0x8] sm:$0xf0] %v161_v37 }
  0x9f   :  { %v241_v38 = vpop.permute.xlu2 %240 }
  0xa1   :  { %151 = vrot.lane.b32.xlu0 %v137_v34, %s879_s21 }
  0xa2   :  { %185 = vrot.lane.b32.xlu1 %v908_v6, %s878_s1  ;;  %149 = vrot.lane.b32.xlu2 %v139_v35, %s879_s21 }
  0xa9   :  { %200 = vrot.lane.b32.xlu0 %v195_v9, %s879_s21 }
  0xaa   :  { %198 = vrot.lane.b32.xlu2 %v194_v8, %s879_s21 }
  0xaf   :  { %v228_v39 = vpop.permute.xlu1 %227  ;;  %v226_v40 = vpop.permute.xlu0 %225 }
  0xb0   :  { %v956_v41 = vsel %vm99_vm2, %v226_v40, %v228_v39  ;;  %v960_v42 = vsel %vm99_vm2, %v228_v39, %v226_v40 }
  0xb1   :  { %v232_v36 = vsel %vm1011_vm8, %v956_v41, 0.0 }
  0xb2   :  { %187 = vrot.lane.b32.xlu2 %v910_v7, %s878_s1 }
  0xb7   :  { %v239_v45 = vpop.permute.xlu1 %238  ;;  %v512_v46 = vpop.permute.xlu2 %511 }
  0xb8   :  { %v972_v47 = vsel %vm108_vm3, %v239_v45, %v241_v38  ;;  %v976_v48 = vsel %vm108_vm3, %v241_v38, %v239_v45 }
  0xb9   :  { %v244_v49 = vsel %vm966_vm4, %v972_v47, 0.0 }
  0xbf   :  { %v514_v50 = vpop.permute.xlu2 %513 }
  0xc0   :  { %v982_v51 = vsel %vm471_vm5, %v512_v46, %v514_v50  ;;  %v516_v53 = vsel %vm471_vm5, %v514_v50, %v512_v46  ;;  %v245_v50 = vsel %vm1023_vm9, %v976_v48, 0.0 }
  0xc1   :  { %519 = vrot.lane.b32.xlu2 %v982_v51, %s878_s1  ;;  %527 = vrot.lane.b32.xlu0 %v982_v51, %s879_s21  ;;  %v991_v58 = vsel %vm78_vm6, %v516_v53, 0.0  ;;  %v539_v53 = vrot.slane %v982_v51, 4 }
  0xc7   :  { %v470_v54 = vpop.permute.xlu1 %469  ;;  %v468_v55 = vpop.permute.xlu0 %467 }
  0xc8   :  { %v473_v56 = vsel %vm471_vm5, %v470_v54, %v468_v55  ;;  %v989_v57 = vsel %vm471_vm5, %v468_v55, %v470_v54  ;;  %v540_v54 = vrot.slane %v991_v58, 4 }
  0xc9   :  { %484 = vrot.lane.b32.xlu1 %v989_v57, %s879_s21  ;;  %521 = vrot.lane.b32.xlu0 %v991_v58, %s878_s1  ;;  %v997_v59 = vsel %vm78_vm6, %v473_v56, 0.0  ;;  %v496_v56 = vrot.slane %v989_v57, 4 }
  0xca   :  { %486 = vrot.lane.b32.xlu2 %v997_v59, %s879_s21 }
  0xd1   :  { %529 = vrot.lane.b32.xlu1 %v991_v58, %s879_s21  ;;  %476 = vrot.lane.b32.xlu0 %v989_v57, %s878_s1  ;;  %v259_v58 = vld [vmem:[#allocation6 + $0x8] sm:$0xff] }
  0xd9   :  { %478 = vrot.lane.b32.xlu1 %v997_v59, %s878_s1 }
  0xec   :  { %v96_v60 = vpop.permute.xlu2 %95 }
  0xf4   :  { %v144_v61 = vpop.permute.xlu2 %143 }
  0xfc   :  { %v150_v62 = vpop.permute.xlu2 %149 }
 0x103   :  { %v98_v0 = vpop.permute.xlu0 %97  ;;  %v107_v1 = vpop.permute.xlu1 %106 }
 0x104   :  { %v100_v4 = vsel %vm99_vm2, %v96_v60, %v98_v0  ;;  %v101_v5 = vsel %vm99_vm2, %v98_v0, %v96_v60  ;;  %v199_v8 = vpop.permute.xlu2 %198  ;;  %v497_v60 = vrot.slane %v997_v59, 4  ;;  %v169_v0 = vld [vmem:[#allocation6] sm:$0xff] }
 0x105   :  { %v102_v6 = vsel %vm1007_vm7, %v101_v5, 0.0  ;;  %v103_v7 = vsel %vm1011_vm8, %v100_v4, 0.0 }
 0x106   :  { %113 = vst [vmem:[#allocation2 + $0x30] sm:$0xf] %v102_v6 }
 0x107   :  { %114 = vst [vmem:[#allocation2] sm:$0xf] %v103_v7 }
 0x10b   :  { %v105_v9 = vpop.permute.xlu0 %104 }
 0x10c   :  { %v109_v13 = vsel %vm108_vm3, %v105_v9, %v107_v1  ;;  %v110_v14 = vsel %vm108_vm3, %v107_v1, %v105_v9  ;;  %v142_v15 = vpop.permute.xlu1 %141  ;;  %v188_v28 = vpop.permute.xlu2 %187 }
 0x10d   :  { %v111_v18 = vsel %vm966_vm4, %v109_v13, 0.0  ;;  %v112_v19 = vsel %vm1023_vm9, %v110_v14, 0.0  ;;  %v145_v20 = vsel %vm99_vm2, %v142_v15, %v144_v61  ;;  %v146_v21 = vsel %vm99_vm2, %v144_v61, %v142_v15  ;;  %v1043_v25 = vld [vmem:[#allocation2 + $0x30] sm:$0xff] }
 0x10e   :  { %123 = vst [vmem:[#allocation2 + $0x28] sm:$0xf] %v111_v18  ;;  %v147_v22 = vsel %vm1007_vm7, %v146_v21, 0.0  ;;  %v148_v23 = vsel %vm1011_vm8, %v145_v20, 0.0  ;;  %v1045_v26 = vld [vmem:[#allocation2] sm:$0xff] }
 0x10f   :  { %124 = vst [vmem:[#allocation2 + $0x20] sm:$0xf] %v112_v19 }
 0x110   :  { %157 = vst [vmem:[#allocation2 + $0x8] sm:$0xf] %v147_v22 }
 0x111   :  { %158 = vst [vmem:[#allocation2 + $0x10] sm:$0xf] %v148_v23 }
 0x112   :  { %214 = vst [vmem:[#allocation2 + $0x30] sm:$0xf0] %v913_v10 }
 0x113   :  { %v152_v27 = vpop.permute.xlu0 %151  ;;  %215 = vst [vmem:[#allocation2] sm:$0xf0] %v915_v11  ;;  %v231_v11 = vsel %vm1007_vm7, %v960_v42, 0.0 }
 0x114   :  { %v153_v29 = vsel %vm108_vm3, %v150_v62, %v152_v27  ;;  %v154_v30 = vsel %vm108_vm3, %v152_v27, %v150_v62  ;;  %v186_v31 = vpop.permute.xlu1 %185 }
 0x115   :  { %v155_v32 = vsel %vm966_vm4, %v153_v29, 0.0  ;;  %v156_v33 = vsel %vm1023_vm9, %v154_v30, 0.0  ;;  %v190_v10 = vsel %vm99_vm2, %v188_v28, %v186_v31  ;;  %v189_v35 = vsel %vm99_vm2, %v186_v31, %v188_v28  ;;  %v174_v42 = vld [vmem:[#allocation2 + $0x28] sm:$0xf] }
 0x116   :  { %167 = vst [vmem:[#allocation2 + $0x18] sm:$0xf] %v155_v32  ;;  %v191_v38 = vsel %vm1007_vm7, %v190_v10, 0.0  ;;  %v192_v39 = vsel %vm1011_vm8, %v189_v35, 0.0  ;;  %v175_v43 = vld [vmem:[#allocation2 + $0x20] sm:$0xf] }
 0x117   :  { %v172_v34 = vld [vmem:[#allocation2 + $0x8] sm:$0xff]  ;;  %168 = vst [vmem:[#allocation2 + $0x38] sm:$0xf] %v156_v33  ;;  %v548_v33 = vld [vmem:[#allocation6 + $0x10] sm:$0xff] }
 0x118   :  { %v173_v37 = vld [vmem:[#allocation2 + $0x10] sm:$0xff]  ;;  %246 = vst [vmem:[#allocation2 + $0x8] sm:$0xf] %v231_v11 }
 0x119   :  { %247 = vst [vmem:[#allocation2 + $0x10] sm:$0xf] %v232_v36 }
 0x11a   :  { %254 = vst [vmem:[#allocation2 + $0x8] sm:$0xf0] %v921_v16 }
 0x11b   :  { %255 = vst [vmem:[#allocation2 + $0x10] sm:$0xf0] %v923_v17  ;;  %v201_v40 = vpop.permute.xlu0 %200  ;;  %v520_v59 = vpop.permute.xlu2 %519 }
 0x11c   :  { %206 = vst [vmem:[#allocation2 + $0x30] sm:$0xf] %v191_v38  ;;  %v202_v41 = vsel %vm108_vm3, %v199_v8, %v201_v40  ;;  %v203_v45 = vsel %vm108_vm3, %v201_v40, %v199_v8 }
 0x11d   :  { %v176_v46 = vld [vmem:[#allocation2 + $0x18] sm:$0xf]  ;;  %207 = vst [vmem:[#allocation2] sm:$0xf] %v192_v39  ;;  %v204_v16 = vsel %vm966_vm4, %v202_v41, 0.0  ;;  %v205_v52 = vsel %vm1023_vm9, %v203_v45, 0.0 }
 0x11e   :  { %v177_v17 = vld [vmem:[#allocation2 + $0x38] sm:$0xf]  ;;  %256 = vst [vmem:[#allocation2 + $0x18] sm:$0xf] %v244_v49 }
 0x11f   :  { %257 = vst [vmem:[#allocation2 + $0x38] sm:$0xf] %v245_v50 }
 0x120   :  { %216 = vst [vmem:[#allocation2 + $0x28] sm:$0xf] %v204_v16 }
 0x121   :  { %217 = vst [vmem:[#allocation2 + $0x20] sm:$0xf] %v205_v52  ;;  %v262_v55 = vld [vmem:[#allocation2 + $0x8] sm:$0xff] }
 0x122   :  { %543 = vst [vmem:[#allocation2 + $0x8] sm:$0xf0] %v539_v53  ;;  %v263_v48 = vld [vmem:[#allocation2 + $0x10] sm:$0xff] }
 0x123   :  { %v260_v47 = vld [vmem:[#allocation2 + $0x30] sm:$0xff]  ;;  %544 = vst [vmem:[#allocation2 + $0x10] sm:$0xf0] %v540_v54 }
 0x124   :  { %500 = vst [vmem:[#allocation2 + $0x30] sm:$0xf0] %v496_v56  ;;  %v261_v49 = vld [vmem:[#allocation2] sm:$0xff]  ;;  %v487_v1 = vpop.permute.xlu2 %486 }
 0x125   :  { %v266_v61 = vld [vmem:[#allocation2 + $0x18] sm:$0xf]  ;;  %501 = vst [vmem:[#allocation2] sm:$0xf0] %v497_v60 }
 0x126   :  { %758 = vmatpush.msk.msra.mxu2 %vm272_vm10, %v266_v61  ;;  %v267_v51 = vld [vmem:[#allocation2 + $0x38] sm:$0xf] }
 0x127   :  { %v264_v62 = vld [vmem:[#allocation2 + $0x28] sm:$0xf]  ;;  %760 = vmatpush.msk.msra.mxu3 %vm272_vm10, %v267_v51 }
 0x128   :  { %754 = vmatpush.msk.msra.mxu0 %vm272_vm10, %v264_v62  ;;  %v265_v57 = vld [vmem:[#allocation2 + $0x20] sm:$0xf]  ;;  %340 = vmatpush.msra.mxu2 %v262_v55 }
 0x129   :  { %756 = vmatpush.msk.msra.mxu1 %vm272_vm10, %v265_v57  ;;  %360 = vmatpush.msra.mxu3 %v263_v48  ;;  %v881_v57 = vmov 256.0  }
 0x12a   :  { %300 = vmatpush.msra.mxu0 %v260_v47  ;;  %766 = vmatpush.msk.msrb.mxu2 %vm272_vm10, %v176_v46  ;;  %789 = vrcp.f32 %v881_v57 }
 0x12b   :  { %320 = vmatpush.msra.mxu1 %v261_v49  ;;  %768 = vmatpush.msk.msrb.mxu3 %vm272_vm10, %v177_v17 }
 0x12c   :  { %762 = vmatpush.msk.msrb.mxu0 %vm272_vm10, %v174_v42  ;;  %435 = vmatpush.msrb.mxu2 %v172_v34 }
 0x12d   :  { %764 = vmatpush.msk.msrb.mxu1 %vm272_vm10, %v175_v43  ;;  %455 = vmatpush.msrb.mxu3 %v173_v37 }
 0x12e   :  { %395 = vmatpush.msrb.mxu0 %v1043_v25  ;;  %759 = vmatmul.msk.f32.vlgmr.msra.gmra.mxu2 %vm268_vm11, %v259_v58 }
 0x12f   :  { %415 = vmatpush.msrb.mxu1 %v1045_v26  ;;  %761 = vmatmul.msk.f32.vlgmr.msra.gmra.mxu3 %vm268_vm11, %v259_v58 }
 0x130   :  { %755 = vmatmul.msk.f32.vlgmr.msra.gmra.mxu0 %vm268_vm11, %v259_v58  ;;  %757 = vmatmul.msk.f32.vlgmr.msra.gmra.mxu1 %vm268_vm11, %v259_v58  ;;  %v790_v58 = vpop.eup %789 }
 0x131   :  { %vm664_vm12 = vweird.f32 %v790_v58 }
 0x133   :  { %v528_v63 = vpop.permute.xlu0 %527 }
 0x136   :  { %767 = vmatmul.msk.f32.vlgmr.msrb.gmra.mxu2 %vm268_vm11, %v169_v0 }
 0x137   :  { %769 = vmatmul.msk.f32.vlgmr.msrb.gmra.mxu3 %vm268_vm11, %v169_v0 }
 0x138   :  { %763 = vmatmul.msk.f32.vlgmr.msrb.gmra.mxu0 %vm268_vm11, %v169_v0  ;;  %765 = vmatmul.msk.f32.vlgmr.msrb.gmra.mxu1 %vm268_vm11, %v169_v0 }
 0x13b   :  { %v485_v4 = vpop.permute.xlu1 %484  ;;  %v522_v5 = vpop.permute.xlu0 %521 }
 0x13c   :  { %v488_v6 = vsel %vm108_vm3, %v485_v4, %v487_v1  ;;  %v489_v7 = vsel %vm108_vm3, %v487_v1, %v485_v4  ;;  %v523_v8 = vsel %vm99_vm2, %v520_v59, %v522_v5  ;;  %v524_v9 = vsel %vm99_vm2, %v522_v5, %v520_v59 }
 0x13d   :  { %v490_v13 = vsel %vm966_vm4, %v488_v6, 0.0  ;;  %v491_v14 = vsel %vm1023_vm9, %v489_v7, 0.0  ;;  %v525_v15 = vsel %vm1007_vm7, %v524_v9, 0.0  ;;  %v526_v18 = vsel %vm1011_vm8, %v523_v8, 0.0 }
 0x13e   :  { %502 = vst [vmem:[#allocation2 + $0x28] sm:$0xf] %v490_v13  ;;  %v660_v59 = vmul.f32 256.0, %v790_v58 }
 0x13f   :  { %503 = vst [vmem:[#allocation2 + $0x20] sm:$0xf] %v491_v14 }
 0x140   :  { %535 = vst [vmem:[#allocation2 + $0x8] sm:$0xf] %v525_v15 }
 0x141   :  { %536 = vst [vmem:[#allocation2 + $0x10] sm:$0xf] %v526_v18 }
 0x143   :  { %v530_v19 = vpop.permute.xlu1 %529  ;;  %v477_v27 = vpop.permute.xlu0 %476 }
 0x144   :  { %v531_v20 = vsel %vm108_vm3, %v528_v63, %v530_v19  ;;  %v532_v21 = vsel %vm108_vm3, %v530_v19, %v528_v63  ;;  %v661_v63 = vsub.f32 1.0, %v660_v59 }
 0x145   :  { %v533_v22 = vsel %vm966_vm4, %v531_v20, 0.0  ;;  %v534_v23 = vsel %vm1023_vm9, %v532_v21, 0.0  ;;  %v553_v25 = vld [vmem:[#allocation2 + $0x28] sm:$0xf] }
 0x146   :  { %545 = vst [vmem:[#allocation2 + $0x18] sm:$0xf] %v533_v22  ;;  %770 = vmatpush.msk.msra.mxu0 %vm272_vm10, %v553_v25  ;;  %v554_v26 = vld [vmem:[#allocation2 + $0x20] sm:$0xf]  ;;  %v662_v0 = vmul.f32 %v790_v58, %v661_v63 }
 0x147   :  { %546 = vst [vmem:[#allocation2 + $0x38] sm:$0xf] %v534_v23  ;;  %772 = vmatpush.msk.msra.mxu1 %vm272_vm10, %v554_v26  ;;  %v551_v10 = vld [vmem:[#allocation2 + $0x8] sm:$0xff] }
 0x148   :  { %v552_v11 = vld [vmem:[#allocation2 + $0x10] sm:$0xff]  ;;  %v663_v1 = vadd.f32 %v790_v58, %v662_v0 }
 0x14a   :  { %v665_v4 = vsel %vm664_vm12, %v790_v58, %v663_v1 }
 0x14b   :  { %v479_v28 = vpop.permute.xlu1 %478 }
 0x14c   :  { %v480_v29 = vsel %vm99_vm2, %v477_v27, %v479_v28  ;;  %v481_v44 = vsel %vm99_vm2, %v479_v28, %v477_v27 }
 0x14d   :  { %v482_v12 = vsel %vm1007_vm7, %v481_v44, 0.0  ;;  %v483_v30 = vsel %vm1011_vm8, %v480_v29, 0.0  ;;  %v555_v31 = vld [vmem:[#allocation2 + $0x18] sm:$0xf] }
 0x14e   :  { %492 = vst [vmem:[#allocation2 + $0x30] sm:$0xf] %v482_v12  ;;  %774 = vmatpush.msk.msra.mxu2 %vm272_vm10, %v555_v31  ;;  %v556_v32 = vld [vmem:[#allocation2 + $0x38] sm:$0xf] }
 0x14f   :  { %493 = vst [vmem:[#allocation2] sm:$0xf] %v483_v30  ;;  %776 = vmatpush.msk.msra.mxu3 %vm272_vm10, %v556_v32 }
 0x150   :  { %627 = vmatpush.msra.mxu2 %v551_v10 }
 0x151   :  { %647 = vmatpush.msra.mxu3 %v552_v11  ;;  %775 = vmatmul.msk.f32.vlgmr.msra.gmra.mxu2 %vm268_vm11, %v548_v33 }
 0x152   :  { %777 = vmatmul.msk.f32.vlgmr.msra.gmra.mxu3 %vm268_vm11, %v548_v33 }
 0x155   :  { %v549_v24 = vld [vmem:[#allocation2 + $0x30] sm:$0xff] }
 0x156   :  { %587 = vmatpush.msra.mxu0 %v549_v24  ;;  %v550_v2 = vld [vmem:[#allocation2] sm:$0xff] }
 0x157   :  { %607 = vmatpush.msra.mxu1 %v550_v2  ;;  %771 = vmatmul.msk.f32.vlgmr.msra.gmra.mxu0 %vm268_vm11, %v548_v33 }
 0x158   :  { %773 = vmatmul.msk.f32.vlgmr.msra.gmra.mxu1 %vm268_vm11, %v548_v33 }
 0x1ad   :  { %v302_v3 = vpop.f32.mrf.mxu0  ;;  %v322_v35 = vpop.f32.mrf.mxu1 }
 0x1b1   :  { %v342_v34 = vpop.f32.mrf.mxu2 }
 0x1b2   :  { %v362_v36 = vpop.f32.mrf.mxu3 }
 0x1b5   :  { %v397_v37 = vpop.f32.mrf.mxu0  ;;  %v417_v39 = vpop.f32.mrf.mxu1 }
 0x1b6   :  { %v398_v42 = vadd.f32 %v397_v37, %v302_v3  ;;  %v418_v41 = vadd.f32 %v417_v39, %v322_v35 }
 0x1b9   :  { %v437_v38 = vpop.f32.mrf.mxu2 }
 0x1ba   :  { %v457_v40 = vpop.f32.mrf.mxu3  ;;  %v438_v43 = vadd.f32 %v437_v38, %v342_v34 }
 0x1bb   :  { %v458_v45 = vadd.f32 %v457_v40, %v362_v36 }
 0x1d4   :  { %v589_v46 = vpop.f32.mrf.mxu0  ;;  %v629_v16 = vpop.f32.mrf.mxu2 }
 0x1d5   :  { %v652_v50 = vadd.f32 %v589_v46, %v398_v42  ;;  %v609_v17 = vpop.f32.mrf.mxu1  ;;  %v1150_v52 = vadd.f32 %v629_v16, %v438_v43  ;;  %v649_v53 = vpop.f32.mrf.mxu3 }
 0x1d6   :  { %v653_v54 = vadd.f32 %v609_v17, %v418_v41  ;;  %v1152_v55 = vadd.f32 %v649_v53, %v458_v45 }
 0x1d7   :  { %v667_v56 = vmul.f32 %v652_v50, %v652_v50  ;;  %v702_v61 = vmul.f32 %v1150_v52, %v1150_v52 }
 0x1d8   :  { %v698_v48 = vadd.f32 %v1152_v55, %v1150_v52  ;;  %v656_v60 = vadd.f32 %v653_v54, %v652_v50  ;;  %v668_v47 = vmul.f32 %v653_v54, %v653_v54  ;;  %v703_v51 = vmul.f32 %v1152_v55, %v1152_v55 }
 0x1da   :  { %699 = vadd.xlane.f32.xlu0 %v698_v48  ;;  %657 = vadd.xlane.f32.xlu2 %v656_v60  ;;  %v669_v49 = vadd.f32 %v668_v47, %v667_v56  ;;  %v704_v62 = vadd.f32 %v703_v51, %v702_v61 }
 0x1dc   :  { %670 = vadd.xlane.f32.xlu1 %v669_v49 }
 0x1e2   :  { %705 = vadd.xlane.f32.xlu2 %v704_v62 }
 0x24d   :  { %v658_v5 = vpop.xlane.xlu2 %657  ;;  %v700_v7 = vpop.xlane.xlu0 %699 }
 0x24e   :  { %v666_v6 = vmul.f32 %v665_v4, %v658_v5  ;;  %v701_v14 = vmul.f32 %v700_v7, %v665_v4 }
 0x24f   :  { %v671_v8 = vpop.xlane.xlu1 %670 }
 0x250   :  { %v672_v9 = vmul.f32 %v671_v8, %v665_v4  ;;  %v673_v13 = vmul.f32 %v666_v6, %v666_v6  ;;  %v708_v20 = vmul.f32 %v701_v14, %v701_v14  ;;  %v675_v32 = vsub.f32 %v652_v50, %v666_v6 }
 0x251   :  { %v676_v33 = vsub.f32 %v653_v54, %v666_v6  ;;  %v710_v37 = vsub.f32 %v1150_v52, %v701_v14  ;;  %v711_v38 = vsub.f32 %v1152_v55, %v701_v14 }
 0x252   :  { %v674_v15 = vsub.f32 %v672_v9, %v673_v13 }
 0x254   :  { %v677_v18 = vadd.f32 1e-05, %v674_v15 }
 0x255   :  { %v706_v19 = vpop.xlane.xlu2 %705 }
 0x256   :  { %v707_v21 = vmul.f32 %v706_v19, %v665_v4  ;;  %791 = vrsqrt.f32 %v677_v18  ;;  %vm684_vm14 = vweird.f32 %v677_v18 }
 0x258   :  { %v709_v22 = vsub.f32 %v707_v21, %v708_v20 }
 0x25a   :  { %v712_v23 = vadd.f32 1e-05, %v709_v22 }
 0x25c   :  { %793 = vrsqrt.f32 %v712_v23  ;;  %v792_v25 = vpop.eup %791  ;;  %vm719_vm3 = vweird.f32 %v712_v23 }
 0x25d   :  { %v679_v26 = vmul.f32 %v792_v25, %v677_v18  ;;  %vm685_vm13 = vweird.f32 %v792_v25 }
 0x25e   :  { %vm686_vm15 = vmor %vm684_vm14, %vm685_vm13 }
 0x25f   :  { %v680_v27 = vmul.f32 %v792_v25, %v679_v26 }
 0x261   :  { %v681_v29 = vmul.f32 0.5, %v680_v27 }
 0x262   :  { %v794_v28 = vpop.eup %793 }
 0x263   :  { %v714_v44 = vmul.f32 %v794_v28, %v712_v23  ;;  %v682_v12 = vsub.f32 1.5, %v681_v29  ;;  %vm720_vm0 = vweird.f32 %v794_v28 }
 0x264   :  { %vm721_vm4 = vmor %vm719_vm3, %vm720_vm0 }
 0x265   :  { %v715_v30 = vmul.f32 %v794_v28, %v714_v44  ;;  %v683_v31 = vmul.f32 %v792_v25, %v682_v12 }
 0x267   :  { %v716_v10 = vmul.f32 0.5, %v715_v30  ;;  %v687_v11 = vsel %vm686_vm15, %v792_v25, %v683_v31 }
 0x268   :  { %v688_v24 = vmul.f32 %v687_v11, %v675_v32  ;;  %v689_v2 = vmul.f32 %v687_v11, %v676_v33 }
 0x269   :  { %v717_v3 = vsub.f32 1.5, %v716_v10 }
 0x26a   :  { %vm690_vm1 = vcmp.ge.f32.partialorder %v688_v24, 0.0  ;;  %vm691_vm2 = vcmp.ge.f32.partialorder %v689_v2, 0.0  ;;  %v692_v34 = vmul.f32 0.01, %v688_v24  ;;  %v693_v35 = vmul.f32 0.01, %v689_v2 }
 0x26b   :  { %v718_v36 = vmul.f32 %v794_v28, %v717_v3 }
 0x26c   :  { %v694_v39 = vsel %vm690_vm1, %v688_v24, %v692_v34  ;;  %v695_v40 = vsel %vm691_vm2, %v689_v2, %v693_v35 }
 0x26d   :  { %696 = vst [vmem:[#allocation8] sm:$0xff] %v694_v39  ;;  %v722_v42 = vsel %vm721_vm4, %v794_v28, %v718_v36 }
 0x26e   :  { %697 = vst [vmem:[#allocation8 + $0x8] sm:$0xff] %v695_v40  ;;  %v723_v43 = vmul.f32 %v722_v42, %v710_v37  ;;  %v724_v41 = vmul.f32 %v722_v42, %v711_v38 }
 0x270   :  { %vm725_vm5 = vcmp.ge.f32.partialorder %v723_v43, 0.0  ;;  %vm726_vm6 = vcmp.ge.f32.partialorder %v724_v41, 0.0  ;;  %v727_v45 = vmul.f32 0.01, %v723_v43  ;;  %v728_v46 = vmul.f32 0.01, %v724_v41 }
 0x272   :  { %v729_v16 = vsel %vm725_vm5, %v723_v43, %v727_v45  ;;  %v730_v50 = vsel %vm726_vm6, %v724_v41, %v728_v46 }
 0x273   :  { %732 = vst [vmem:[#allocation8 + $0x10] sm:$0xff] %v729_v16 }
 0x274   :  { %733 = vst [vmem:[#allocation8 + $0x18] sm:$0xff] %v730_v50 }
 0x275   :  { %746 = dma.vmem_to_hbm [thread:$0]  %s739_s27, 512, %s741_s25, [#allocation5], %s883_s28, %s883_s28, %s877_s0  }
 0x276   :  { %871 = dma.done.wait [#allocation5], 512  }
 0x277   :  { %872 = vsyncadd [#allocation5], 4294966784 }
 0x278   :  { %751 = vsyncpa [#allocation4], 1 }
 0x279   :  { %752 = vsyncpa [#allocation7], 1 }
 0x27a   :  { %753 = vsyncpa [#allocation5], 1 }

</bundles_post_ra>
